<compile_context>
chip_gen: v7x
topology: tpu7x:2x2x1
jax: 0.10.0
libtpu: 0.0.40
codegen_flags: <defaults>
</compile_context>

<pallas_src>
import jax
import jax.numpy as jnp
from jax.experimental import pallas as pl
from jax.experimental.pallas import tpu as pltpu


def _prefer_two_way_split() -> bool:
    """True on parts where a 2-way 'parallel' grid maps onto 2 TensorCores."""
    try:
        kind = jax.devices()[0].device_kind.lower()
    except Exception:
        return False
    return any(tag in kind for tag in ("v7", "7x", "v4", "v5p"))


def _make_pos_embed_kernel(H: int, W: int):
    HW = H * W
    N = W + H

    def kernel(lhs_ref, idx_ref, o_ref):
        # lhs_ref: (channels_per_step, W+H) f32, block-structured:
        #   col-half rows are [colT[c, :], 0_H], row-half rows are [0_W, rowT[c, :]].
        # idx_ref: (2, H*W) int32 -- idx[0, l] = l % W (w), idx[1, l] = l // W (h).
        # o_ref:   (channels_per_step, H*W)  lane-dense, NCHW-flattened output.
        r = jax.lax.broadcasted_iota(jnp.int32, (N, HW), 0)   # selector-row index
        w_of_l = idx_ref[0:1, :]                              # (1, HW)
        h_of_l = idx_ref[1:2, :]                              # (1, HW)
        col_sel = (r < W) & (w_of_l == r)                     # top W rows pick w
        row_sel = (r >= W) & (h_of_l == (r - W))              # bottom H rows pick h
        sel = jnp.where(col_sel | row_sel, 1.0, 0.0).astype(jnp.float32)  # (N, HW)
        # One-hot selection on the MXU; HIGHEST keeps f32 values bit-exact.
        out = jnp.dot(lhs_ref[...], sel,
                      preferred_element_type=jnp.float32,
                      precision=jax.lax.Precision.HIGHEST)
        o_ref[...] = out.astype(o_ref.dtype)

    return kernel


def position_embedding_learned(x, mask, col_weight, row_weight, *,
                               out_dtype=jnp.float32, expand_batch=True):
    """Pallas implementation of PositionEmbeddingLearned.forward.

    x:          (B, C, H, W)  -- only the shape is used (as in PyTorch)
    mask:       unused on purpose (kept for signature parity with the module)
    col_weight: (50, F) learned col embedding table
    row_weight: (50, F) learned row embedding table
    returns:    (B, 2F, H, W) if expand_batch else (1, 2F, H, W)
                (the block is batch-independent; keeping it un-broadcast lets
                 the consumer broadcast lazily instead of materializing B copies)
    """
    del mask  # intentionally unused, mirrors the PyTorch module
    B = x.shape[0]
    H, W = int(x.shape[-2]), int(x.shape[-1])
    F = col_weight.shape[1]
    HW = H * W

    # nn.Embedding would raise on out-of-range indices; [:W]/[:H] would
    # silently truncate, so check explicitly.
    if W > col_weight.shape[0] or H > row_weight.shape[0]:
        raise ValueError(
            f"spatial dims (H={H}, W={W}) exceed embedding table size "
            f"({row_weight.shape[0]}, {col_weight.shape[0]})")

    # Tiny host/XLA-side glue (everything here is <= (2F, W+H) or (2, H*W)).
    colT = col_weight[:W].astype(jnp.float32).T              # (F, W)
    rowT = row_weight[:H].astype(jnp.float32).T              # (F, H)
    lhs = jnp.concatenate(
        [jnp.concatenate([colT, jnp.zeros((F, H), jnp.float32)], axis=1),
         jnp.concatenate([jnp.zeros((F, W), jnp.float32), rowT], axis=1)],
        axis=0)                                              # (2F, W+H)
    l = jnp.arange(HW, dtype=jnp.int32)
    idx = jnp.stack([l % W, l // W], axis=0).astype(jnp.int32)  # (2, HW)

    # One grid step on single-TC chips (v5e/v6e); two "parallel" steps (one
    # channel half per core) on multi-TC chips.  F%8==0 keeps the split block
    # legal under the (8,128) rule; otherwise fall back to a single step.
    split = _prefer_two_way_split() and (F % 8 == 0)
    n_steps = 2 if split else 1
    cF = F if split else 2 * F                                # channels per step

    itemsize = jnp.dtype(out_dtype).itemsize
    cost = pl.CostEstimate(
        flops=2 * (2 * F) * (W + H) * HW,
        transcendentals=0,
        bytes_accessed=(2 * F * HW) * itemsize + (2 * F * (W + H) + 2 * HW) * 4)

    pos_flat = pl.pallas_call(
        _make_pos_embed_kernel(H, W),
        out_shape=jax.ShapeDtypeStruct((2 * F, HW), out_dtype),
        grid_spec=pltpu.PrefetchScalarGridSpec(
            num_scalar_prefetch=0,
            grid=(n_steps,),
            in_specs=[
                pl.BlockSpec((cF, W + H), lambda i: (i, 0)),
                pl.BlockSpec((2, HW), lambda i: (0, 0)),
            ],
            out_specs=pl.BlockSpec((cF, HW), lambda i: (i, 0)),
        ),
        compiler_params=pltpu.CompilerParams(
            dimension_semantics=("parallel",)),
        cost_estimate=cost,
    )(lhs, idx)

    # (2F, H*W) -> (2F, H, W): identical row-major bytes, metadata-only.
    pos = pos_flat.reshape(2 * F, H, W)[None]                 # (1, 2F, H, W)
    if expand_batch:
        pos = jnp.broadcast_to(pos, (B, 2 * F, H, W))
    return pos


def _reference(x, col_weight, row_weight):
    """Pure-JAX reference mirroring the PyTorch forward exactly."""
    B = x.shape[0]
    H, W = x.shape[-2], x.shape[-1]
    x_emb = col_weight[:W]                       # (W, F)
    y_emb = row_weight[:H]                       # (H, F)
    pos = jnp.concatenate(
        [jnp.broadcast_to(x_emb[None, :, :], (H, W, x_emb.shape[-1])),
         jnp.broadcast_to(y_emb[:, None, :], (H, W, y_emb.shape[-1]))],
        axis=-1)                                 # (H, W, 2F)
    pos = jnp.transpose(pos, (2, 0, 1))[None]    # (1, 2F, H, W)
    return jnp.broadcast_to(pos, (B,) + pos.shape[1:])


if __name__ == "__main__":
    # Small shapes consistent with the module's forward.
    B, C, H, W = 2, 4, 16, 16
    num_pos_feats = 32

    key = jax.random.PRNGKey(0)
    k_x, k_row, k_col = jax.random.split(key, 3)

    x = jax.random.normal(k_x, (B, C, H, W), dtype=jnp.float32)
    mask = jnp.zeros((B, H, W), dtype=jnp.bool_)

    # nn.init.uniform_ -> U[0, 1); embedding tables are (50, num_pos_feats).
    row_weight = jax.random.uniform(k_row, (50, num_pos_feats), dtype=jnp.float32)
    col_weight = jax.random.uniform(k_col, (50, num_pos_feats), dtype=jnp.float32)

    pos = position_embedding_learned(x, mask, col_weight, row_weight)
    pos = jax.block_until_ready(pos)
    ref = _reference(x, col_weight, row_weight)
    assert pos.shape == (B, 2 * num_pos_feats, H, W), pos.shape
    assert jnp.allclose(pos, ref, rtol=1e-6, atol=1e-6), "mismatch vs reference"

    # Non-square spatial dims (catches h/w transposition bugs).
    x2 = jax.random.normal(k_x, (1, 3, 12, 20), dtype=jnp.float32)
    mask2 = jnp.zeros((1, 12, 20), dtype=jnp.bool_)
    pos2 = position_embedding_learned(x2, mask2, col_weight, row_weight)
    pos2 = jax.block_until_ready(pos2)
    ref2 = _reference(x2, col_weight, row_weight)
    assert pos2.shape == ref2.shape, pos2.shape
    assert jnp.allclose(pos2, ref2, rtol=1e-6, atol=1e-6), "mismatch (non-square)"

    print("KERNEL_OK")
</pallas_src>

<mosaic_0001>
module attributes {stable_mosaic.version = 11 : i64} {
  func.func @kernel(%arg0: i32, %arg1: memref<64x32xf32, #tpu.memory_space<vmem>>, %arg2: memref<2x256xi32, #tpu.memory_space<vmem>>, %arg3: memref<64x256xf32, #tpu.memory_space<vmem>>) attributes {dimension_semantics = [#tpu.dimension_semantics<parallel>], iteration_bounds = array<i64: 1>, scalar_prefetch = 0 : i64, scratch_operands = 0 : i64, tpu.core_type = #tpu.core_type<tc>, window_params = [{transform_indices = @transform_0, window_bounds = array<i64: 64, 32>}, {pipeline_mode = #tpu.pipeline_mode<synchronous>, transform_indices = @transform_1, window_bounds = array<i64: 2, 256>}, {transform_indices = @transform_2, window_bounds = array<i64: 64, 256>}]} {
    %0 = tpu.iota {dimensions = array<i32: 0>} : vector<32x256xi32>
    %c0 = arith.constant 0 : index
    %c0_0 = arith.constant 0 : index
    %1 = vector.load %arg2[%c0, %c0_0] : memref<2x256xi32, #tpu.memory_space<vmem>>, vector<1x256xi32>
    %c1 = arith.constant 1 : index
    %c0_1 = arith.constant 0 : index
    %2 = vector.load %arg2[%c1, %c0_1] : memref<2x256xi32, #tpu.memory_space<vmem>>, vector<1x256xi32>
    %c16_i32 = arith.constant 16 : i32
    %3 = vector.broadcast %c16_i32 : i32 to vector<32x256xi32>
    %4 = arith.cmpi slt, %0, %3 : vector<32x256xi32>
    %5 = vector.broadcast %1 : vector<1x256xi32> to vector<32x256xi32>
    %6 = arith.cmpi eq, %5, %0 : vector<32x256xi32>
    %7 = arith.andi %4, %6 : vector<32x256xi1>
    %c16_i32_2 = arith.constant 16 : i32
    %8 = vector.broadcast %c16_i32_2 : i32 to vector<32x256xi32>
    %9 = arith.cmpi sge, %0, %8 : vector<32x256xi32>
    %c16_i32_3 = arith.constant 16 : i32
    %10 = vector.broadcast %c16_i32_3 : i32 to vector<32x256xi32>
    %11 = arith.subi %0, %10 : vector<32x256xi32>
    %12 = vector.broadcast %2 : vector<1x256xi32> to vector<32x256xi32>
    %13 = arith.cmpi eq, %12, %11 : vector<32x256xi32>
    %14 = arith.andi %9, %13 : vector<32x256xi1>
    %15 = arith.ori %7, %14 : vector<32x256xi1>
    %cst = arith.constant 1.000000e+00 : f32
    %cst_4 = arith.constant 0.000000e+00 : f32
    %16 = vector.broadcast %cst : f32 to vector<32x256xf32>
    %17 = vector.broadcast %cst_4 : f32 to vector<32x256xf32>
    %18 = arith.select %15, %16, %17 : vector<32x256xi1>, vector<32x256xf32>
    %c0_5 = arith.constant 0 : index
    %c0_6 = arith.constant 0 : index
    %19 = vector.load %arg1[%c0_5, %c0_6] : memref<64x32xf32, #tpu.memory_space<vmem>>, vector<64x32xf32>
    %cst_7 = arith.constant dense<0.000000e+00> : vector<64x256xf32>
    %20 = tpu.matmul %19, %18, %cst_7 {dimension_numbers = #tpu.dot_dimension_numbers<[1], [0], [0], [1], [0, 0, 1, 1], [], []>, precision = #tpu.contract_precision<fp32>} : vector<64x32xf32>, vector<32x256xf32>, vector<64x256xf32> -> vector<64x256xf32>
    %c0_8 = arith.constant 0 : index
    %c0_9 = arith.constant 0 : index
    %21 = vector.load %arg3[%c0_8, %c0_9] : memref<64x256xf32, #tpu.memory_space<vmem>>, vector<64x256xf32>
    tpu.vector_store %arg3[%c0_8, %c0_9], %20 {strides = array<i32>} : memref<64x256xf32, #tpu.memory_space<vmem>>, vector<64x256xf32>,
    return
  }
  func.func @transform_0(%arg0: i32) -> (i32, i32) {
    %c0_i32 = arith.constant 0 : i32
    %c0_i32_0 = arith.constant 0 : i32
    return %arg0, %c0_i32 : i32, i32
  }
  func.func @transform_1(%arg0: i32) -> (i32, i32) {
    %c0_i32 = arith.constant 0 : i32
    %c0_i32_0 = arith.constant 0 : i32
    %c0_i32_1 = arith.constant 0 : i32
    return %c0_i32, %c0_i32_0 : i32, i32
  }
  func.func @transform_2(%arg0: i32) -> (i32, i32) {
    %c0_i32 = arith.constant 0 : i32
    %c0_i32_0 = arith.constant 0 : i32
    return %arg0, %c0_i32 : i32, i32
  }
}

</mosaic_0001>

<bundles_post_ra>
// kernel: tpu_custom_call.1
= control target key start
LH: loop header
LB: loop body
LE: loop exit
PB: predicated region body
PF: predicated region fallthrough
CT: control target
= control target key end

     0   :  { %v12_v0 = vlaneseq  ;;  %v1183_v3 = vmov 0.0   ;;  %vm103_vm0 = vcmask 261120   ;;  %s1511_s0 = inlined_call_operand.vmem [shape: f32[64,32], index: 0, kind: input, shape index: {}]   ;;  %s1512_s1 = inlined_call_operand.vmem [shape: s32[2,256], index: 1, kind: input, shape index: {}]   ;;  %s1513_s2 = inlined_call_operand.hbm [shape: f32[64,256], index: 2, kind: output, shape index: {}]  }
   0x1   :  { %v17_v1 = vld [vmem:[%s1512_s1] ss:$2 sm:$0x3]  ;;  %v998_v2 = vld [vmem:[%s1512_s1 + $0x1] ss:$2 sm:$0x3]  ;;  %192 = vmatprep.mubr.f32.mxu1 %v1183_v3  ;;  %635 = vmatprep.mubr.f32.mxu0 %v1183_v3 }
   0x2   :  { %v95_v4 = vld [vmem:[%s1511_s0] sm:$0xff]  ;;  %v96_v5 = vld [vmem:[%s1511_s0 + $0x8] sm:$0xff]  ;;  %v1217_v6 = vshrl.u32 %v12_v0, 7  ;;  %v97_v9 = vld [vmem:[%s1511_s0 + $0x10] sm:$0xff] }
   0x3   :  { %v105_v7 = vsel %vm103_vm0, %v95_v4, 0  ;;  %v108_v8 = vsel %vm103_vm0, %v96_v5, 0  ;;  %v98_v10 = vld [vmem:[%s1511_s0 + $0x18] sm:$0xff]  ;;  %v111_v13 = vsel %vm103_vm0, %v97_v9, 0 }
   0x4   :  { %v1227_v11 = vand.u32 4294901760, %v105_v7  ;;  %v1229_v12 = vand.u32 4294901760, %v108_v8  ;;  %v1233_v14 = vsel %vm103_vm0, %v98_v10, 0  ;;  %v14_v15 = vadd.s32 8, %v1217_v6 }
   0x5   :  { %v30_v16 = vsub.s32 1, %v1217_v6  ;;  %v26_v17 = vsub.s32 0, %v1217_v6  ;;  %v16_v18 = vadd.s32 24, %v1217_v6  ;;  %v1245_v21 = vand.u32 4294901760, %v111_v13 }
   0x6   :  { %v1240_v19 = vsub.f32 %v105_v7, %v1227_v11  ;;  %v1243_v20 = vsub.f32 %v108_v8, %v1229_v12  ;;  %v1248_v22 = vand.u32 4294901760, %v1233_v14 }
   0x7   :  { %7 = vsyncpa [#allocation3], 0  ;;  %v31_v23 = vrot.slane %v17_v1, %v30_v16  ;;  %v27_v24 = vrot.slane %v17_v1, %v26_v17  ;;  %v1001_v25 = vadd.s32 4294967280, %v16_v18  ;;  %v62_v26 = vrot.slane %v998_v2, %v30_v16  ;;  %v99_v31 = vld [vmem:[%s1511_s0 + $0x20] sm:$0xff] }
   0x8   :  { %v58_v27 = vrot.slane %v998_v2, %v26_v17  ;;  %v195_v28 = vand.u32 4294901760, %v1240_v19  ;;  %v206_v29 = vand.u32 4294901760, %v1243_v20  ;;  %v1253_v30 = vsub.f32 %v111_v13, %v1245_v21 }
   0x9   :  { %vm33_vm1 = vcmp.eq.s32.totalorder %v31_v23, %v1217_v6  ;;  %vm35_vm2 = vcmp.eq.s32.totalorder %v31_v23, %v14_v15  ;;  %vm32_vm3 = vcmp.eq.s32.totalorder %v27_v24, %v1217_v6  ;;  %vm34_vm4 = vcmp.eq.s32.totalorder %v27_v24, %v14_v15 }
   0xa   :  { %v88_v32 = vsel %vm33_vm1, 1.0, %v1183_v3  ;;  %v90_v33 = vsel %vm35_vm2, 1.0, %v1183_v3  ;;  %vm1262_vm5 = vmpackc.low %vm35_vm2, %vm33_vm1  ;;  %v87_v35 = vsel %vm32_vm3, 1.0, %v1183_v3  ;;  %v89_v36 = vsel %vm34_vm4, 1.0, %v1183_v3 }
   0xb   :  { %v1184_v37 = vmov 1.0|1.0   ;;  %v1271_v38 = vsub.f32 %v88_v32, %v88_v32  ;;  %v1273_v39 = vsub.f32 %v90_v33, %v90_v33  ;;  %vm1278_vm6 = vmpackc.low %vm34_vm4, %vm32_vm3  ;;  %v1282_v41 = vsub.f32 %v87_v35, %v87_v35  ;;  %v100_v35 = vld [vmem:[%s1511_s0 + $0x28] sm:$0xff] }
   0xc   :  { %1027 = vmatprep.subr.msk.bf16.mxu1 %vm1262_vm5, %v1184_v37  ;;  %1051 = vmatprep.subr.msk.bf16.mxu0 %vm1262_vm5, %v1184_v37  ;;  %v217_v42 = vand.u32 4294901760, %v1253_v30  ;;  %v1288_v43 = vsub.f32 %v89_v36, %v89_v36  ;;  %vm68_vm7 = vcmp.eq.s32.totalorder %v62_v26, %v1217_v6  ;;  %vm70_vm8 = vcmp.eq.s32.totalorder %v62_v26, %v1001_v25  ;;  %v101_v36 = vld [vmem:[%s1511_s0 + $0x30] sm:$0xff] }
   0xd   :  { %1029 = vmatpush1.bf16.msk.msra.mxu1 %vm1278_vm6, %v1184_v37  ;;  %1053 = vmatpush1.bf16.msk.msra.mxu0 %vm1278_vm6, %v1184_v37  ;;  %v117_v44 = vsel %vm103_vm0, %v99_v31, 0  ;;  %v287_v45 = vand.u32 4294901760, %v1282_v41  ;;  %v92_v46 = vsel %vm68_vm7, 1.0, %v1183_v3  ;;  %v94_v47 = vsel %vm70_vm8, 1.0, %v1183_v3  ;;  %vm1298_vm9 = vmpackc.low %vm70_vm8, %vm68_vm7 }
   0xe   :  { %vm67_vm10 = vcmp.eq.s32.totalorder %v58_v27, %v1217_v6  ;;  %v297_v49 = vand.u32 4294901760, %v1288_v43  ;;  %1031 = vmatprep.subr.msk.bf16.mxu1 %vm1298_vm9, %v1184_v37  ;;  %v1307_v50 = vsub.f32 %v92_v46, %v92_v46  ;;  %v1309_v51 = vsub.f32 %v94_v47, %v94_v47  ;;  %1055 = vmatprep.subr.msk.bf16.mxu0 %vm1298_vm9, %v1184_v37 }
   0xf   :  { %vm69_vm11 = vcmp.eq.s32.totalorder %v58_v27, %v1001_v25  ;;  %v288_v52 = vsub.f32 %v1282_v41, %v287_v45  ;;  %v91_v53 = vsel %vm67_vm10, 1.0, %v1183_v3  ;;  %v196_v56 = vsub.f32 %v1240_v19, %v195_v28 }
  0x10   :  { %v93_v54 = vsel %vm69_vm11, 1.0, %v1183_v3  ;;  %vm1317_vm12 = vmpackc.low %vm69_vm11, %vm67_vm10  ;;  %v298_v57 = vsub.f32 %v1288_v43, %v297_v49  ;;  %v1326_v58 = vsub.f32 %v91_v53, %v91_v53  ;;  %v282_v60 = vand.u32 4294901760, %v1271_v38  ;;  %v102_v53 = vld [vmem:[%s1511_s0 + $0x38] sm:$0xff]  ;;  %s1185_s0 = smov [#allocation2]  }
  0x11   :  { %1033 = vmatpush1.bf16.msk.msra.mxu1 %vm1317_vm12, %v1184_v37  ;;  %v1328_v59 = vsub.f32 %v93_v54, %v93_v54  ;;  %1057 = vmatpush1.bf16.msk.msra.mxu0 %vm1317_vm12, %v1184_v37  ;;  %v289_v61 = vand.u32 4294901760, %v288_v52  ;;  %v197_v62 = vand.u32 4294901760, %v196_v56  ;;  %v292_v63 = vand.u32 4294901760, %v1273_v39  ;;  %s987_s28 = sshll.u32 %s1185_s0, 4  ;;  %s988_s28 = int_to_ptr.vmem [resolvable:$true] %s987_s28 }
  0x12   :  { %v1060_v0 = vpack.c.bf16 %v297_v49, %v287_v45  ;;  %v299_v1 = vand.u32 4294901760, %v298_v57  ;;  %v307_v2 = vand.u32 4294901760, %v1326_v58  ;;  %v283_v5 = vsub.f32 %v1271_v38, %v282_v60  ;;  %s1159_s29 = scalar_lea.vmem %s988_s28, 2048  ;;  %p1164_p1 = scmp.lt.s32.totalorder %s988_s28, %s988_s28 }
  0x13   :  { %v317_v4 = vand.u32 4294901760, %v1328_v59  ;;  %v293_v6 = vsub.f32 %v1273_v39, %v292_v63  ;;  %v1058_v7 = vpack.c.bf16 %v292_v63, %v282_v60  ;;  %v207_v8 = vsub.f32 %v1243_v20, %v206_v29  ;;  %p1160_p0 = scmp.ne.s32.totalorder %s988_s28, %s1159_s29  ;;  %p1165_p2 = scmp.lt.s32.totalorder %s1159_s29, %s1159_s29 }
  0x14   :  { %198 = vmatmul.mubr.f32.vlgmr.msra.gmra.mrb[0].mxu1 %v197_v62  ;;  %639 = vmatmul.mubr.f32.vlgmr.msra.gmra.mrb[0].mxu0 %v195_v28  ;;  %v1342_v9 = vand.u32 4294901760, %v117_v44  ;;  %v284_v10 = vand.u32 4294901760, %v283_v5  ;;  %v1036_v13 = vpack.c.bf16 %v299_v1, %v289_v61  ;;  %v218_v15 = vsub.f32 %v1253_v30, %v217_v42 }
  0x15   :  { %203 = vmatprep.mubr.f32.mxu1 %v1183_v3  ;;  %644 = vmatprep.mubr.f32.mxu0 %v1183_v3  ;;  %v1351_v16 = vsub.f32 %v1233_v14, %v1248_v22  ;;  %v294_v17 = vand.u32 4294901760, %v293_v6  ;;  %v208_v18 = vand.u32 4294901760, %v207_v8  ;;  %v302_v24 = vand.u32 4294901760, %v1307_v50  ;;  %p1166_p3 = por %p1165_p2, %p1164_p1 }
  0x16   :  { %1059 = vmatprep.subr.bf16.mxu0 %v1058_v7  ;;  %v1354_v23 = vsub.f32 %v117_v44, %v1342_v9  ;;  %v219_v25 = vand.u32 4294901760, %v218_v15  ;;  %v312_v27 = vand.u32 4294901760, %v1309_v51  ;;  %v308_v28 = vsub.f32 %v1326_v58, %v307_v2 }
  0x17   :  { %1061 = vmatpush1.bf16.msra.mxu0 %v1060_v0  ;;  %v228_v26 = vand.u32 4294901760, %v1351_v16  ;;  %v1034_v31 = vpack.c.bf16 %v294_v17, %v284_v10  ;;  %v303_v32 = vsub.f32 %v1307_v50, %v302_v24  ;;  %v318_v33 = vsub.f32 %v1328_v59, %v317_v4  ;;  %p1167_p4 = pnand %p1166_p3, %p1160_p0 }
  0x18   :  { %209 = vmatmul.mubr.f32.gmra.mrb[2].mxu1 %v208_v18  ;;  %648 = vmatmul.mubr.f32.gmra.mrb[2].mxu0 %v206_v29  ;;  %v239_v14 = vand.u32 4294901760, %v1354_v23  ;;  %v313_v44 = vsub.f32 %v1309_v51, %v312_v27  ;;  %v1062_v45 = vpack.c.bf16 %v312_v27, %v302_v24  ;;  %v309_v47 = vand.u32 4294901760, %v308_v28 }
  0x19   :  { %214 = vmatprep.mubr.f32.mxu1 %v1183_v3  ;;  %653 = vmatprep.mubr.f32.mxu0 %v1183_v3  ;;  %v229_v29 = vsub.f32 %v1351_v16, %v228_v26  ;;  %v304_v46 = vand.u32 4294901760, %v303_v32  ;;  %v319_v49 = vand.u32 4294901760, %v318_v33  ;;  %v1064_v52 = vpack.c.bf16 %v317_v4, %v307_v2 }
  0x1a   :  { %1035 = vmatprep.subr.bf16.mxu1 %v1034_v31  ;;  %v314_v54 = vand.u32 4294901760, %v313_v44  ;;  %1063 = vmatprep.subr.bf16.mxu0 %v1062_v45  ;;  %v120_v56 = vsel %vm103_vm0, %v100_v35, 0  ;;  %v123_v57 = vsel %vm103_vm0, %v101_v36, 0  ;;  %v240_v61 = vsub.f32 %v1354_v23, %v239_v14 }
  0x1b   :  { %1037 = vmatpush1.bf16.msra.mxu1 %v1036_v13  ;;  %v230_v60 = vand.u32 4294901760, %v229_v29  ;;  %v1383_v62 = vand.u32 4294901760, %v120_v56  ;;  %v1385_v63 = vand.u32 4294901760, %v123_v57  ;;  %v126_v1 = vsel %vm103_vm0, %v102_v53, 0  ;;  %1065 = vmatpush1.bf16.msra.mxu0 %v1064_v52 }
  0x1c   :  { %220 = vmatmul.mubr.f32.gmra.mrb[4].mxu1 %v219_v25  ;;  %657 = vmatmul.mubr.f32.gmra.mrb[4].mxu0 %v217_v42  ;;  %v1038_v0 = vpack.c.bf16 %v314_v54, %v304_v46  ;;  %v1040_v2 = vpack.c.bf16 %v319_v49, %v309_v47  ;;  %v1396_v5 = vand.u32 4294901760, %v126_v1  ;;  %v1042_v6 = vpack.c.bf16 %v1273_v39, %v1271_v38 }
  0x1d   :  { %225 = vmatprep.mubr.f32.mxu1 %v1183_v3  ;;  %662 = vmatprep.mubr.f32.mxu0 %v1183_v3  ;;  %v1391_v4 = vsub.f32 %v120_v56, %v1383_v62  ;;  %v1394_v42 = vsub.f32 %v123_v57, %v1385_v63  ;;  %v241_v7 = vand.u32 4294901760, %v240_v61  ;;  %v1044_v25 = vpack.c.bf16 %v1288_v43, %v1282_v41 }
  0x1e   :  { %1039 = vmatprep.subr.bf16.mxu1 %v1038_v0  ;;  %1067 = vmatprep.subr.msk.bf16.mxu0 %vm1262_vm5, %v1184_v37  ;;  %v1406_v13 = vsub.f32 %v126_v1, %v1396_v5  ;;  %v1048_v27 = vpack.c.bf16 %v1328_v59, %v1326_v58 }
  0x1f   :  { %v250_v8 = vand.u32 4294901760, %v1391_v4  ;;  %v261_v10 = vand.u32 4294901760, %v1394_v42  ;;  %1041 = vmatpush1.bf16.msra.mxu1 %v1040_v2 }
  0x20   :  { %231 = vmatmul.mubr.f32.gmra.mrb[6].mxu1 %v230_v60  ;;  %666 = vmatmul.mubr.f32.gmra.mrb[6].mxu0 %v228_v26  ;;  %v272_v15 = vand.u32 4294901760, %v1406_v13  ;;  %v1046_v26 = vpack.c.bf16 %v1309_v51, %v1307_v50 }
  0x21   :  { %236 = vmatprep.mubr.f32.mxu1 %v1183_v3  ;;  %671 = vmatprep.mubr.f32.mxu0 %v1183_v3  ;;  %v251_v38 = vsub.f32 %v1391_v4, %v250_v8  ;;  %v262_v39 = vsub.f32 %v1394_v42, %v261_v10 }
  0x22   :  { %1043 = vmatprep.subr.bf16.mxu1 %v1042_v6  ;;  %v273_v18 = vsub.f32 %v1406_v13, %v272_v15 }
  0x23   :  { %v252_v34 = vand.u32 4294901760, %v251_v38  ;;  %v263_v17 = vand.u32 4294901760, %v262_v39 }
  0x24   :  { %242 = vmatmul.mubr.f32.gmra.mrb[8].mxu1 %v241_v7  ;;  %675 = vmatmul.mubr.f32.gmra.mrb[8].mxu0 %v239_v14  ;;  %v274_v24 = vand.u32 4294901760, %v273_v18 }
  0x25   :  { %247 = vmatprep.mubr.f32.mxu1 %v1183_v3  ;;  %680 = vmatprep.mubr.f32.mxu0 %v1183_v3 }
  0x28   :  { %253 = vmatmul.mubr.f32.gmra.mrb[10].mxu1 %v252_v34  ;;  %684 = vmatmul.mubr.f32.gmra.mrb[10].mxu0 %v250_v8 }
  0x29   :  { %258 = vmatprep.mubr.f32.mxu1 %v1183_v3  ;;  %689 = vmatprep.mubr.f32.mxu0 %v1183_v3 }
  0x2c   :  { %264 = vmatmul.mubr.f32.gmra.mrb[12].mxu1 %v263_v17  ;;  %693 = vmatmul.mubr.f32.gmra.mrb[12].mxu0 %v261_v10 }
  0x2d   :  { %269 = vmatprep.mubr.f32.mxu1 %v1183_v3  ;;  %698 = vmatprep.mubr.f32.mxu0 %v1183_v3 }
  0x30   :  { %275 = vmatmul.mubr.f32.gmra.mrb[14].mxu1 %v274_v24  ;;  %702 = vmatmul.mubr.f32.gmra.mrb[14].mxu0 %v272_v15 }
  0x31   :  { %377 = vmatprep.mubr.f32.mxu1 %v1183_v3  ;;  %788 = vmatprep.mubr.f32.mxu0 %v1183_v3 }
  0x34   :  { %379 = vmatmul.mubr.f32.vlgmr.msra.gmra.mrb[0].mxu1 %v1227_v11  ;;  %790 = vmatmul.mubr.f32.vlgmr.msra.gmra.mrb[0].mxu0 %v1227_v11 }
  0x35   :  { %384 = vmatprep.mubr.f32.mxu1 %v1183_v3  ;;  %1045 = vmatpush1.bf16.msra.mxu1 %v1044_v25 }
  0x36   :  { %795 = vmatprep.mubr.f32.mxu0 %v1183_v3  ;;  %1069 = vmatpush1.bf16.msk.msra.mxu0 %vm1278_vm6, %v1184_v37 }
  0x37   :  { %1047 = vmatprep.subr.bf16.mxu1 %v1046_v26  ;;  %1071 = vmatprep.subr.msk.bf16.mxu0 %vm1298_vm9, %v1184_v37 }
  0x38   :  { %386 = vmatmul.mubr.f32.gmra.mrb[2].mxu1 %v1229_v12  ;;  %797 = vmatmul.mubr.f32.gmra.mrb[2].mxu0 %v1229_v12 }
  0x39   :  { %391 = vmatprep.mubr.f32.mxu1 %v1183_v3  ;;  %802 = vmatprep.mubr.f32.mxu0 %v1183_v3 }
  0x3a   :  { %1049 = vmatpush1.bf16.msra.mxu1 %v1048_v27  ;;  %1073 = vmatpush1.bf16.msk.msra.mxu0 %vm1317_vm12, %v1184_v37 }
  0x3c   :  { %393 = vmatmul.mubr.f32.gmra.mrb[4].mxu1 %v1245_v21  ;;  %804 = vmatmul.mubr.f32.gmra.mrb[4].mxu0 %v1245_v21 }
  0x3d   :  { %398 = vmatprep.mubr.f32.mxu1 %v1183_v3  ;;  %809 = vmatprep.mubr.f32.mxu0 %v1183_v3 }
  0x40   :  { %400 = vmatmul.mubr.f32.gmra.mrb[6].mxu1 %v1248_v22  ;;  %811 = vmatmul.mubr.f32.gmra.mrb[6].mxu0 %v1248_v22 }
  0x41   :  { %405 = vmatprep.mubr.f32.mxu1 %v1183_v3  ;;  %816 = vmatprep.mubr.f32.mxu0 %v1183_v3 }
  0x44   :  { %407 = vmatmul.mubr.f32.gmra.mrb[8].mxu1 %v1342_v9  ;;  %818 = vmatmul.mubr.f32.gmra.mrb[8].mxu0 %v1342_v9 }
  0x45   :  { %412 = vmatprep.mubr.f32.mxu1 %v1183_v3  ;;  %823 = vmatprep.mubr.f32.mxu0 %v1183_v3 }
  0x48   :  { %414 = vmatmul.mubr.f32.gmra.mrb[10].mxu1 %v1383_v62  ;;  %825 = vmatmul.mubr.f32.gmra.mrb[10].mxu0 %v1383_v62 }
  0x49   :  { %419 = vmatprep.mubr.f32.mxu1 %v1183_v3  ;;  %830 = vmatprep.mubr.f32.mxu0 %v1183_v3 }
  0x4c   :  { %421 = vmatmul.mubr.f32.gmra.mrb[12].mxu1 %v1385_v63  ;;  %832 = vmatmul.mubr.f32.gmra.mrb[12].mxu0 %v1385_v63 }
  0x4d   :  { %426 = vmatprep.mubr.f32.mxu1 %v1183_v3  ;;  %837 = vmatprep.mubr.f32.mxu0 %v1183_v3 }
  0x50   :  { %428 = vmatmul.mubr.f32.gmra.mrb[14].mxu1 %v1396_v5  ;;  %839 = vmatmul.mubr.f32.gmra.mrb[14].mxu0 %v1396_v5 }
  0x51   :  { %506 = vmatprep.mubr.f32.mxu1 %v1183_v3  ;;  %909 = vmatprep.mubr.f32.mxu0 %v1183_v3 }
  0x54   :  { %509 = vmatmul.mubr.f32.vlgmr.msra.gmra.mrb[0].mxu1 %v1240_v19  ;;  %911 = vmatmul.mubr.f32.vlgmr.msra.gmra.mrb[0].mxu0 %v1227_v11 }
  0x55   :  { %514 = vmatprep.mubr.f32.mxu1 %v1183_v3  ;;  %916 = vmatprep.mubr.f32.mxu0 %v1183_v3 }
  0x58   :  { %517 = vmatmul.mubr.f32.gmra.mrb[2].mxu1 %v1243_v20  ;;  %918 = vmatmul.mubr.f32.gmra.mrb[2].mxu0 %v1229_v12 }
  0x59   :  { %522 = vmatprep.mubr.f32.mxu1 %v1183_v3  ;;  %923 = vmatprep.mubr.f32.mxu0 %v1183_v3 }
  0x5c   :  { %525 = vmatmul.mubr.f32.gmra.mrb[4].mxu1 %v1253_v30  ;;  %925 = vmatmul.mubr.f32.gmra.mrb[4].mxu0 %v1245_v21 }
  0x5d   :  { %530 = vmatprep.mubr.f32.mxu1 %v1183_v3  ;;  %930 = vmatprep.mubr.f32.mxu0 %v1183_v3 }
  0x60   :  { %533 = vmatmul.mubr.f32.gmra.mrb[6].mxu1 %v1351_v16  ;;  %932 = vmatmul.mubr.f32.gmra.mrb[6].mxu0 %v1248_v22 }
  0x61   :  { %538 = vmatprep.mubr.f32.mxu1 %v1183_v3  ;;  %937 = vmatprep.mubr.f32.mxu0 %v1183_v3 }
  0x64   :  { %541 = vmatmul.mubr.f32.gmra.mrb[8].mxu1 %v1354_v23  ;;  %939 = vmatmul.mubr.f32.gmra.mrb[8].mxu0 %v1342_v9 }
  0x65   :  { %546 = vmatprep.mubr.f32.mxu1 %v1183_v3  ;;  %944 = vmatprep.mubr.f32.mxu0 %v1183_v3 }
  0x68   :  { %549 = vmatmul.mubr.f32.gmra.mrb[10].mxu1 %v1391_v4  ;;  %946 = vmatmul.mubr.f32.gmra.mrb[10].mxu0 %v1383_v62 }
  0x69   :  { %554 = vmatprep.mubr.f32.mxu1 %v1183_v3  ;;  %951 = vmatprep.mubr.f32.mxu0 %v1183_v3 }
  0x6c   :  { %557 = vmatmul.mubr.f32.gmra.mrb[12].mxu1 %v1394_v42  ;;  %953 = vmatmul.mubr.f32.gmra.mrb[12].mxu0 %v1385_v63 }
  0x6d   :  { %562 = vmatprep.mubr.f32.mxu1 %v1183_v3  ;;  %958 = vmatprep.mubr.f32.mxu0 %v1183_v3 }
  0x70   :  { %565 = vmatmul.mubr.f32.gmra.mrb[14].mxu1 %v1406_v13  ;;  %960 = vmatmul.mubr.f32.gmra.mrb[14].mxu0 %v1396_v5 }
 0x127   :  { %v510_v11 = vpop.f32.mrb[0].mxu1  ;;  %v912_v12 = vpop.f32.mrb[0].mxu0 }
 0x128   :  { %v1074_v19 = vadd.f32 %v912_v12, %v510_v11  ;;  %v512_v20 = vpop.f32.mrb[1].mxu1  ;;  %v914_v21 = vpop.f32.mrb[1].mxu0 }
 0x129   :  { %v1075_v22 = vadd.f32 %v914_v21, %v512_v20 }
 0x12a   :  { %966 = vst [vmem:[#allocation2] sm:$0xff] %v1074_v19 }
 0x12b   :  { %967 = vst [vmem:[#allocation2 + $0x8] sm:$0xff] %v1075_v22  ;;  %v518_v30 = vpop.f32.mrb[2].mxu1  ;;  %v919_v37 = vpop.f32.mrb[2].mxu0 }
 0x12c   :  { %v1076_v40 = vadd.f32 %v919_v37, %v518_v30  ;;  %v520_v41 = vpop.f32.mrb[3].mxu1  ;;  %v921_v43 = vpop.f32.mrb[3].mxu0 }
 0x12d   :  { %v1077_v48 = vadd.f32 %v921_v43, %v520_v41 }
 0x12e   :  { %968 = vst [vmem:[#allocation2 + $0x10] sm:$0xff] %v1076_v40 }
 0x12f   :  { %969 = vst [vmem:[#allocation2 + $0x18] sm:$0xff] %v1077_v48  ;;  %v526_v3 = vpop.f32.mrb[4].mxu1  ;;  %v926_v50 = vpop.f32.mrb[4].mxu0 }
 0x130   :  { %v1078_v51 = vadd.f32 %v926_v50, %v526_v3  ;;  %v528_v55 = vpop.f32.mrb[5].mxu1  ;;  %v928_v58 = vpop.f32.mrb[5].mxu0 }
 0x131   :  { %v1079_v59 = vadd.f32 %v928_v58, %v528_v55 }
 0x132   :  { %970 = vst [vmem:[#allocation2 + $0x20] sm:$0xff] %v1078_v51 }
 0x133   :  { %971 = vst [vmem:[#allocation2 + $0x28] sm:$0xff] %v1079_v59  ;;  %v534_v9 = vpop.f32.mrb[6].mxu1  ;;  %v933_v16 = vpop.f32.mrb[6].mxu0 }
 0x134   :  { %v1080_v23 = vadd.f32 %v933_v16, %v534_v9  ;;  %v536_v28 = vpop.f32.mrb[7].mxu1  ;;  %v935_v31 = vpop.f32.mrb[7].mxu0 }
 0x135   :  { %v1081_v14 = vadd.f32 %v935_v31, %v536_v28 }
 0x136   :  { %972 = vst [vmem:[#allocation2 + $0x30] sm:$0xff] %v1080_v23 }
 0x137   :  { %973 = vst [vmem:[#allocation2 + $0x38] sm:$0xff] %v1081_v14  ;;  %v542_v32 = vpop.f32.mrb[8].mxu1  ;;  %v940_v33 = vpop.f32.mrb[8].mxu0 }
 0x138   :  { %v1082_v35 = vadd.f32 %v940_v33, %v542_v32  ;;  %v544_v36 = vpop.f32.mrb[9].mxu1  ;;  %v942_v29 = vpop.f32.mrb[9].mxu0 }
 0x139   :  { %v1083_v44 = vadd.f32 %v942_v29, %v544_v36 }
 0x13a   :  { %974 = vst [vmem:[#allocation2 + $0x40] sm:$0xff] %v1082_v35 }
 0x13b   :  { %975 = vst [vmem:[#allocation2 + $0x48] sm:$0xff] %v1083_v44  ;;  %v550_v45 = vpop.f32.mrb[10].mxu1  ;;  %v947_v46 = vpop.f32.mrb[10].mxu0 }
 0x13c   :  { %v1084_v47 = vadd.f32 %v947_v46, %v550_v45  ;;  %v552_v49 = vpop.f32.mrb[11].mxu1  ;;  %v949_v52 = vpop.f32.mrb[11].mxu0 }
 0x13d   :  { %v1085_v53 = vadd.f32 %v949_v52, %v552_v49 }
 0x13e   :  { %976 = vst [vmem:[#allocation2 + $0x50] sm:$0xff] %v1084_v47 }
 0x13f   :  { %977 = vst [vmem:[#allocation2 + $0x58] sm:$0xff] %v1085_v53  ;;  %v558_v54 = vpop.f32.mrb[12].mxu1  ;;  %v954_v56 = vpop.f32.mrb[12].mxu0 }
 0x140   :  { %v1086_v57 = vadd.f32 %v954_v56, %v558_v54  ;;  %v560_v60 = vpop.f32.mrb[13].mxu1  ;;  %v956_v61 = vpop.f32.mrb[13].mxu0 }
 0x141   :  { %v1087_v62 = vadd.f32 %v956_v61, %v560_v60 }
 0x142   :  { %978 = vst [vmem:[#allocation2 + $0x60] sm:$0xff] %v1086_v57 }
 0x143   :  { %979 = vst [vmem:[#allocation2 + $0x68] sm:$0xff] %v1087_v62  ;;  %v566_v63 = vpop.f32.mrb[14].mxu1  ;;  %v961_v0 = vpop.f32.mrb[14].mxu0 }
 0x144   :  { %v1088_v1 = vadd.f32 %v961_v0, %v566_v63  ;;  %v568_v2 = vpop.f32.mrb[15].mxu1  ;;  %v963_v4 = vpop.f32.mrb[15].mxu0 }
 0x145   :  { %v1089_v42 = vadd.f32 %v963_v4, %v568_v2 }
 0x146   :  { %980 = vst [vmem:[#allocation2 + $0x70] sm:$0xff] %v1088_v1 }
 0x147   :  { %981 = vst [vmem:[#allocation2 + $0x78] sm:$0xff] %v1089_v42 }
 0x148   :  { %1170 = shalt.err (!%p1167_p4)
}
 0x149   :  { %s1171_s4 = scalar_lea.hbm %s1513_s2, 2048 }
 0x14a   :  { %p1172_p5 = scmp.ne.s32.totalorder %s1513_s2, %s1171_s4  ;;  %p1175_p6 = scmp.lt.u32.totalorder %s1171_s4, %s1513_s2 }
 0x14c   :  { %p1177_p7 = pnand %p1175_p6, %p1172_p5 }
 0x14e   :  { %1180 = shalt.err (!%p1177_p7)
}
 0x14f   :  { %s1186_s9 = smov 256   ;;  %s1187_s10 = smov 16  }
 0x150   :  { %993 = dma.vmem_to_hbm [thread:$0]  %s988_s28, 2048, %s1513_s2, [#allocation3], %s1186_s9, %s1186_s9, %s1187_s10  }
 0x151   :  { %1181 = dma.done.wait [#allocation3], 2048  }
 0x152   :  { %1182 = vsyncadd [#allocation3], 4294965248 }
 0x153   :  { %997 = vsyncpa [#allocation3], 1 }

</bundles_post_ra>
